<compile_context>
chip_gen: v5e
topology: v5e:2x2
jax: 0.10.0
libtpu: 0.0.40
codegen_flags: <defaults>
</compile_context>

<pallas_src>
import jax
import jax.numpy as jnp
import numpy as np
from jax.experimental import pallas as pl
from jax.experimental.pallas import tpu as pltpu


# --------------------------------- kernel ------------------------------------

def channel_attention_kernel(x_ref, wqkv_ref, wproj_ref, bproj_ref,
                             temp_ref, maskb_ref, o_ref):
    # x_ref:    [1, N, C] f32        wqkv_ref: [C, 3C] bf16
    # wproj_ref:[C, C]   bf16        bproj_ref:[1, C]  f32
    # temp_ref: [1, C]   f32 (per-head temperature broadcast over lanes)
    # maskb_ref:[C, C]   f32 (0 on head-diagonal blocks, -1e30 elsewhere)
    x = x_ref[0]                                            # [N, C] f32
    C = x.shape[-1]

    # qkv projection: bf16 operands, f32 accumulation on the MXU.
    qkv = jnp.dot(x.astype(jnp.bfloat16), wqkv_ref[...],
                  preferred_element_type=jnp.float32)        # [N, 3C] f32
    q = qkv[:, :C]                                           # lane-aligned slices
    k = qkv[:, C:2 * C]
    v = qkv[:, 2 * C:]

    # torch: q,k -> [B,H,d,N], F.normalize(dim=-1)  ==  L2-normalize each
    # channel column over the token axis (axis 0 of the [N, C] tile).
    # Temperature is folded into the q scale (logit rows == q channels).
    q_norm = jnp.sqrt(jnp.sum(q * q, axis=0, keepdims=True))          # [1, C]
    k_norm = jnp.sqrt(jnp.sum(k * k, axis=0, keepdims=True))          # [1, C]
    q_scale = temp_ref[...] / jnp.maximum(q_norm, 1e-12)              # [1, C]
    k_scale = 1.0 / jnp.maximum(k_norm, 1e-12)                        # [1, C]
    qs = (q * q_scale).astype(jnp.bfloat16)                           # [N, C]
    ks = (k * k_scale).astype(jnp.bfloat16)                           # [N, C]

    # All heads at once: channel gram matrix [C, C], contraction over tokens.
    a = jax.lax.dot_general(qs, ks, (((0,), (0,)), ((), ())),
                            preferred_element_type=jnp.float32)       # [C, C]
    a = a + maskb_ref[...]               # mask everything off the head blocks

    # Row softmax (restricted to each head's d x d block; masked lanes -> 0).
    m = jnp.max(a, axis=-1, keepdims=True)
    e = jnp.exp(a - m)
    p = e * pl.reciprocal(jnp.sum(e, axis=-1, keepdims=True), approx=True)

    # out[n, r] = sum_c p[r, c] * v[n, c]   (token-major, no per-head concat)
    out = jax.lax.dot_general(v.astype(jnp.bfloat16),
                              p.astype(jnp.bfloat16),
                              (((1,), (1,)), ((), ())),
                              preferred_element_type=jnp.float32)     # [N, C]

    # Final projection.
    y = jnp.dot(out.astype(jnp.bfloat16), wproj_ref[...],
                preferred_element_type=jnp.float32) + bproj_ref[...]
    # TODO(synk): attn_drop / proj_drop are identity here (eval mode); training
    # dropout would need pltpu.prng_seed + pltpu.prng_random_bits masks.
    o_ref[0] = y.astype(o_ref.dtype)


# --------------------------------- wrapper -----------------------------------

def channel_attention(x, params, num_heads):
    B, N, C = x.shape
    assert C % num_heads == 0
    d = C // num_heads

    # Per-head temperature broadcast to one value per channel lane.
    temp_lanes = jnp.repeat(params["temp"].astype(jnp.float32), d).reshape(1, C)
    # Block-diagonal additive mask: 0 inside each head's d x d block, -1e30 off.
    head_id = jnp.arange(C, dtype=jnp.int32) // d
    mask_bias = jnp.where(head_id[:, None] == head_id[None, :],
                          0.0, -1e30).astype(jnp.float32)

    # Weights shipped to the kernel in bf16 (f32 accumulation inside).
    wqkv_bf16 = params["wqkv"].astype(jnp.bfloat16)
    wproj_bf16 = params["wproj"].astype(jnp.bfloat16)

    def rep(shape):  # replicated across the batch grid (constant block index)
        return pl.BlockSpec(shape, lambda b: (0,) * len(shape))

    in_specs = [
        pl.BlockSpec((1, N, C), lambda b: (b, 0, 0)),   # x
        rep((C, 3 * C)),                                # qkv weight^T (bf16)
        rep((C, C)),                                    # proj weight^T (bf16)
        rep((1, C)),                                    # proj bias
        rep((1, C)),                                    # temperature per lane
        rep((C, C)),                                    # block-diag mask bias
    ]
    out_spec = pl.BlockSpec((1, N, C), lambda b: (b, 0, 0))

    return pl.pallas_call(
        channel_attention_kernel,
        out_shape=jax.ShapeDtypeStruct((B, N, C), x.dtype),
        grid=(B,),
        in_specs=in_specs,
        out_specs=out_spec,
        compiler_params=pltpu.CompilerParams(dimension_semantics=("parallel",)),
    )(x, wqkv_bf16, wproj_bf16, params["bproj"], temp_lanes, mask_bias)


# ----------------------- deterministic parameter init ------------------------

def init_params(key, C, H):
    ks = jax.random.split(key, 4)

    def bf16_repr(a):  # keep f32 copies that are exactly bf16-representable
        return a.astype(jnp.bfloat16).astype(jnp.float32)

    return dict(
        wqkv=bf16_repr(0.05 * jax.random.normal(ks[0], (C, 3 * C), jnp.float32)),
        wproj=bf16_repr(0.05 * jax.random.normal(ks[1], (C, C), jnp.float32)),
        bproj=0.02 * jax.random.normal(ks[2], (1, C), jnp.float32),
        temp=1.0 + 0.1 * jax.random.normal(ks[3], (H,), jnp.float32),
    )


# ------------------------------ pure-JAX reference ---------------------------

def reference_forward(x, p, H):
    """Float32 reference mirroring the PyTorch ChannelAttention.forward."""
    B, N, C = x.shape
    d = C // H
    qkv = x @ p["wqkv"]                                               # [B, N, 3C]
    qkv = qkv.reshape(B, N, 3, H, d).transpose(2, 0, 3, 1, 4)         # [3, B, H, N, d]
    q, k, v = qkv[0], qkv[1], qkv[2]
    q = q.transpose(0, 1, 3, 2)                                       # [B, H, d, N]
    k = k.transpose(0, 1, 3, 2)
    v = v.transpose(0, 1, 3, 2)

    def l2n(t):  # F.normalize(dim=-1), eps=1e-12
        n = jnp.sqrt(jnp.sum(t * t, axis=-1, keepdims=True))
        return t / jnp.maximum(n, 1e-12)

    attn = jnp.einsum("bhdn,bhen->bhde", l2n(q), l2n(k))
    attn = attn * p["temp"][None, :, None, None]
    attn = jax.nn.softmax(attn, axis=-1)
    out = jnp.einsum("bhde,bhen->bhdn", attn, v)                      # [B, H, d, N]
    out = out.transpose(0, 3, 1, 2).reshape(B, N, C)
    return out @ p["wproj"] + p["bproj"]


# ----------------------------------- main -------------------------------------

if __name__ == "__main__":
    # Small but lane-dense shapes: C = 128 (one full lane vreg), 8 heads, d = 16.
    B, N, C, H = 2, 64, 128, 8
    key = jax.random.PRNGKey(0)
    kx, kp = jax.random.split(key)
    x = jax.random.normal(kx, (B, N, C), dtype=jnp.float32)
    params = init_params(kp, C, H)

    out = jax.block_until_ready(channel_attention(x, params, H))
    ref = reference_forward(x, params, H)

    # Tolerance covers the bf16 matmul operands + approx reciprocal in softmax
    # (the f32 reference uses the exact torch math).
    np.testing.assert_allclose(np.asarray(out), np.asarray(ref),
                               rtol=2e-2, atol=2e-2)

    print("KERNEL_OK")
</pallas_src>

<mosaic_0001>
module attributes {stable_mosaic.version = 11 : i64} {
  func.func @channel_attention_kernel(%arg0: i32, %arg1: memref<1x64x128xf32, #tpu.memory_space<vmem>>, %arg2: memref<128x384xbf16, #tpu.memory_space<vmem>>, %arg3: memref<128x128xbf16, #tpu.memory_space<vmem>>, %arg4: memref<1x128xf32, #tpu.memory_space<vmem>>, %arg5: memref<1x128xf32, #tpu.memory_space<vmem>>, %arg6: memref<128x128xf32, #tpu.memory_space<vmem>>, %arg7: memref<1x64x128xf32, #tpu.memory_space<vmem>>) attributes {dimension_semantics = [#tpu.dimension_semantics<parallel>], iteration_bounds = array<i64: 2>, scalar_prefetch = 0 : i64, scratch_operands = 0 : i64, tpu.core_type = #tpu.core_type<tc>, window_params = [{transform_indices = @transform_0, window_bounds = array<i64: 1, 64, 128>}, {pipeline_mode = #tpu.pipeline_mode<synchronous>, transform_indices = @transform_1, window_bounds = array<i64: 128, 384>}, {pipeline_mode = #tpu.pipeline_mode<synchronous>, transform_indices = @transform_2, window_bounds = array<i64: 128, 128>}, {pipeline_mode = #tpu.pipeline_mode<synchronous>, transform_indices = @transform_3, window_bounds = array<i64: 1, 128>}, {pipeline_mode = #tpu.pipeline_mode<synchronous>, transform_indices = @transform_4, window_bounds = array<i64: 1, 128>}, {pipeline_mode = #tpu.pipeline_mode<synchronous>, transform_indices = @transform_5, window_bounds = array<i64: 128, 128>}, {transform_indices = @transform_6, window_bounds = array<i64: 1, 64, 128>}]} {
    %c0 = arith.constant 0 : index
    %c0_0 = arith.constant 0 : index
    %c0_1 = arith.constant 0 : index
    %0 = vector.load %arg1[%c0, %c0_0, %c0_1] : memref<1x64x128xf32, #tpu.memory_space<vmem>>, vector<1x64x128xf32>
    %1 = vector.shape_cast %0 : vector<1x64x128xf32> to vector<64x128xf32>
    %2 = arith.truncf %1 : vector<64x128xf32> to vector<64x128xbf16>
    %c0_2 = arith.constant 0 : index
    %c0_3 = arith.constant 0 : index
    %3 = vector.load %arg2[%c0_2, %c0_3] : memref<128x384xbf16, #tpu.memory_space<vmem>>, vector<128x384xbf16>
    %cst = arith.constant dense<0.000000e+00> : vector<64x384xf32>
    %4 = tpu.matmul %2, %3, %cst {dimension_numbers = #tpu.dot_dimension_numbers<[1], [0], [0], [1], [0, 0, 1, 1], [], []>} : vector<64x128xbf16>, vector<128x384xbf16>, vector<64x384xf32> -> vector<64x384xf32>
    %5 = vector.extract_strided_slice %4 {offsets = [0, 0], sizes = [64, 128], strides = [1, 1]} : vector<64x384xf32> to vector<64x128xf32>
    %6 = vector.extract_strided_slice %4 {offsets = [0, 128], sizes = [64, 128], strides = [1, 1]} : vector<64x384xf32> to vector<64x128xf32>
    %7 = vector.extract_strided_slice %4 {offsets = [0, 256], sizes = [64, 128], strides = [1, 1]} : vector<64x384xf32> to vector<64x128xf32>
    %8 = arith.mulf %5, %5 : vector<64x128xf32>
    %cst_4 = arith.constant dense<0.000000e+00> : vector<128xf32>
    %9 = vector.multi_reduction <add>, %8, %cst_4 [0] : vector<64x128xf32> to vector<128xf32>
    %10 = vector.shape_cast %9 : vector<128xf32> to vector<1x128xf32>
    %11 = math.sqrt %10 : vector<1x128xf32>
    %12 = arith.mulf %6, %6 : vector<64x128xf32>
    %cst_5 = arith.constant dense<0.000000e+00> : vector<128xf32>
    %13 = vector.multi_reduction <add>, %12, %cst_5 [0] : vector<64x128xf32> to vector<128xf32>
    %14 = vector.shape_cast %13 : vector<128xf32> to vector<1x128xf32>
    %15 = math.sqrt %14 : vector<1x128xf32>
    %c0_6 = arith.constant 0 : index
    %c0_7 = arith.constant 0 : index
    %16 = vector.load %arg5[%c0_6, %c0_7] : memref<1x128xf32, #tpu.memory_space<vmem>>, vector<1x128xf32>
    %cst_8 = arith.constant 9.99999996E-13 : f32
    %17 = vector.broadcast %cst_8 : f32 to vector<1x128xf32>
    %18 = arith.maximumf %11, %17 : vector<1x128xf32>
    %19 = arith.divf %16, %18 : vector<1x128xf32>
    %cst_9 = arith.constant 9.99999996E-13 : f32
    %20 = vector.broadcast %cst_9 : f32 to vector<1x128xf32>
    %21 = arith.maximumf %15, %20 : vector<1x128xf32>
    %cst_10 = arith.constant 1.000000e+00 : f32
    %22 = vector.broadcast %cst_10 : f32 to vector<1x128xf32>
    %23 = arith.divf %22, %21 : vector<1x128xf32>
    %24 = vector.broadcast %19 : vector<1x128xf32> to vector<64x128xf32>
    %25 = arith.mulf %5, %24 : vector<64x128xf32>
    %26 = arith.truncf %25 : vector<64x128xf32> to vector<64x128xbf16>
    %27 = vector.broadcast %23 : vector<1x128xf32> to vector<64x128xf32>
    %28 = arith.mulf %6, %27 : vector<64x128xf32>
    %29 = arith.truncf %28 : vector<64x128xf32> to vector<64x128xbf16>
    %cst_11 = arith.constant dense<0.000000e+00> : vector<128x128xf32>
    %30 = tpu.matmul %26, %29, %cst_11 {dimension_numbers = #tpu.dot_dimension_numbers<[0], [0], [1], [1], [0, 1, 1, 1], [], []>} : vector<64x128xbf16>, vector<64x128xbf16>, vector<128x128xf32> -> vector<128x128xf32>
    %c0_12 = arith.constant 0 : index
    %c0_13 = arith.constant 0 : index
    %31 = vector.load %arg6[%c0_12, %c0_13] : memref<128x128xf32, #tpu.memory_space<vmem>>, vector<128x128xf32>
    %32 = arith.addf %30, %31 : vector<128x128xf32>
    %cst_14 = arith.constant dense<0xFF800000> : vector<128xf32>
    %33 = vector.multi_reduction <maximumf>, %32, %cst_14 [1] : vector<128x128xf32> to vector<128xf32>
    %34 = vector.shape_cast %33 : vector<128xf32> to vector<128x1xf32>
    %35 = vector.broadcast %34 : vector<128x1xf32> to vector<128x128xf32>
    %36 = arith.subf %32, %35 : vector<128x128xf32>
    %37 = math.exp %36 : vector<128x128xf32>
    %cst_15 = arith.constant dense<0.000000e+00> : vector<128xf32>
    %38 = vector.multi_reduction <add>, %37, %cst_15 [1] : vector<128x128xf32> to vector<128xf32>
    %39 = vector.shape_cast %38 : vector<128xf32> to vector<128x1xf32>
    %40 = tpu.reciprocal %39 {approx = true} : vector<128x1xf32> -> vector<128x1xf32>
    %41 = vector.broadcast %40 : vector<128x1xf32> to vector<128x128xf32>
    %42 = arith.mulf %37, %41 : vector<128x128xf32>
    %43 = arith.truncf %7 : vector<64x128xf32> to vector<64x128xbf16>
    %44 = arith.truncf %42 : vector<128x128xf32> to vector<128x128xbf16>
    %cst_16 = arith.constant dense<0.000000e+00> : vector<64x128xf32>
    %45 = tpu.matmul %43, %44, %cst_16 {dimension_numbers = #tpu.dot_dimension_numbers<[1], [1], [0], [0], [0, 0, 1, 0], [], []>} : vector<64x128xbf16>, vector<128x128xbf16>, vector<64x128xf32> -> vector<64x128xf32>
    %46 = arith.truncf %45 : vector<64x128xf32> to vector<64x128xbf16>
    %c0_17 = arith.constant 0 : index
    %c0_18 = arith.constant 0 : index
    %47 = vector.load %arg3[%c0_17, %c0_18] : memref<128x128xbf16, #tpu.memory_space<vmem>>, vector<128x128xbf16>
    %cst_19 = arith.constant dense<0.000000e+00> : vector<64x128xf32>
    %48 = tpu.matmul %46, %47, %cst_19 {dimension_numbers = #tpu.dot_dimension_numbers<[1], [0], [0], [1], [0, 0, 1, 1], [], []>} : vector<64x128xbf16>, vector<128x128xbf16>, vector<64x128xf32> -> vector<64x128xf32>
    %c0_20 = arith.constant 0 : index
    %c0_21 = arith.constant 0 : index
    %49 = vector.load %arg4[%c0_20, %c0_21] : memref<1x128xf32, #tpu.memory_space<vmem>>, vector<1x128xf32>
    %50 = vector.broadcast %49 : vector<1x128xf32> to vector<64x128xf32>
    %51 = arith.addf %48, %50 : vector<64x128xf32>
    %c0_22 = arith.constant 0 : index
    %c0_23 = arith.constant 0 : index
    %c0_24 = arith.constant 0 : index
    %52 = vector.load %arg7[%c0_22, %c0_23, %c0_24] : memref<1x64x128xf32, #tpu.memory_space<vmem>>, vector<1x64x128xf32>
    %53 = vector.shape_cast %52 : vector<1x64x128xf32> to vector<64x128xf32>
    %54 = vector.shape_cast %51 : vector<64x128xf32> to vector<1x64x128xf32>
    tpu.vector_store %arg7[%c0_22, %c0_23, %c0_24], %54 {strides = array<i32>} : memref<1x64x128xf32, #tpu.memory_space<vmem>>, vector<1x64x128xf32>,
    return
  }
  func.func @transform_0(%arg0: i32) -> (i32, i32, i32) {
    %c0_i32 = arith.constant 0 : i32
    %c0_i32_0 = arith.constant 0 : i32
    %c0_i32_1 = arith.constant 0 : i32
    return %arg0, %c0_i32, %c0_i32_0 : i32, i32, i32
  }
  func.func @transform_1(%arg0: i32) -> (i32, i32) {
    %c0_i32 = arith.constant 0 : i32
    %c0_i32_0 = arith.constant 0 : i32
    %c0_i32_1 = arith.constant 0 : i32
    return %c0_i32, %c0_i32_0 : i32, i32
  }
  func.func @transform_2(%arg0: i32) -> (i32, i32) {
    %c0_i32 = arith.constant 0 : i32
    %c0_i32_0 = arith.constant 0 : i32
    %c0_i32_1 = arith.constant 0 : i32
    return %c0_i32, %c0_i32_0 : i32, i32
  }
  func.func @transform_3(%arg0: i32) -> (i32, i32) {
    %c0_i32 = arith.constant 0 : i32
    %c0_i32_0 = arith.constant 0 : i32
    %c0_i32_1 = arith.constant 0 : i32
    return %c0_i32, %c0_i32_0 : i32, i32
  }
  func.func @transform_4(%arg0: i32) -> (i32, i32) {
    %c0_i32 = arith.constant 0 : i32
    %c0_i32_0 = arith.constant 0 : i32
    %c0_i32_1 = arith.constant 0 : i32
    return %c0_i32, %c0_i32_0 : i32, i32
  }
  func.func @transform_5(%arg0: i32) -> (i32, i32) {
    %c0_i32 = arith.constant 0 : i32
    %c0_i32_0 = arith.constant 0 : i32
    %c0_i32_1 = arith.constant 0 : i32
    return %c0_i32, %c0_i32_0 : i32, i32
  }
  func.func @transform_6(%arg0: i32) -> (i32, i32, i32) {
    %c0_i32 = arith.constant 0 : i32
    %c0_i32_0 = arith.constant 0 : i32
    %c0_i32_1 = arith.constant 0 : i32
    return %arg0, %c0_i32, %c0_i32_0 : i32, i32, i32
  }
}

</mosaic_0001>

<bundles_post_ra>
// kernel: tpu_custom_call.1
= control target key start
LH: loop header
LB: loop body
LE: loop exit
PB: predicated region body
PF: predicated region fallthrough
CT: control target
= control target key end

     0   :  { %11 = vsyncpa [#allocation3], 0  ;;  %s2249_s0 = inlined_call_operand.hbm [shape: f32[2,64,128], index: 0, kind: input, shape index: {}]   ;;  %s2250_s1 = inlined_call_operand.hbm [shape: bf16[128,384], index: 1, kind: input, shape index: {}]   ;;  %s2251_s2 = inlined_call_operand.hbm [shape: bf16[128,128], index: 2, kind: input, shape index: {}]   ;;  %s2252_s3 = inlined_call_operand.vmem [shape: f32[1,128], index: 3, kind: input, shape index: {}]   ;;  %s2253_s4 = inlined_call_operand.vmem [shape: f32[1,128], index: 4, kind: input, shape index: {}]   ;;  %s2254_s5 = inlined_call_operand.hbm [shape: f32[128,128], index: 5, kind: input, shape index: {}]   ;;  %s2255_s6 = inlined_call_operand.hbm [shape: f32[2,64,128], index: 6, kind: output, shape index: {}]  }
   0x1   :  { %13 = vsyncpa [#allocation3 + $0x1], 0 }
   0x2   :  { %14 = vsyncpa [#allocation6], 0 }
   0x3   :  { %15 = vsyncpa [#allocation9], 0 }
   0x4   :  { %16 = vsyncpa [#allocation4], 0 }
   0x5   :  { %18 = vsyncpa [#allocation4 + $0x1], 0  ;;  %s1833_s21 = smov 0   ;;  %s1835_s22 = smov 0  }
   0x6   :  { %s1837_s23 = smov 0   ;;  %s1839_s24 = smov 0  }
   0x7 LB: > { %s1854_s25 = sadd.s32 4294967295, %s1785_s24   ;;  %s1226_s26 = sadd.s32 4294967294, %s1785_s24   ;;  %s1785_s24 = sphi %s1839_s24, %s2270_s24   ;;  %s1781_s23 = sphi %s1837_s23, %s2269_s23   ;;  %s1777_s22 = sphi %s1835_s22, %s2268_s22   ;;  %s1773_s21 = sphi %s1833_s21, %s2267_s21  }
   0x8   : > { %p44_p0 = scmp.ne.s32.totalorder %s1777_s22, %s1773_s21  ;;  %p45_p1 = scmp.eq.s32.totalorder %s1854_s25, 0 }
   0x9   : > { %p173_p2 = scmp.eq.s32.totalorder %s1854_s25, 1  ;;  %p179_p3 = scmp.eq.s32.totalorder %s1226_s26, 1 }
   0xa   : > { %p1863_p4 = por %p45_p1, %p44_p0  ;;  %p1227_p5 = scmp.ge.s32.totalorder %s1785_s24, 1 }
   0xb   : > { %p1868_p6 = por %p179_p3, %p44_p0  ;;  %p186_p7 = scmp.lt.s32.totalorder %s1785_s24, 3 }
   0xc   : > { %s197_s7 = sshll.u32 %s2250_s1, 4  ;;  %s1787_s9 = smov [#allocation5]   ;;  %s198_s7 = int_to_ptr.hbm [resolvable:$true] %s197_s7 }
   0xd   : > { %p1876_p8 = pnand %p1227_p5, %p186_p7  ;;  %s199_s10 = sshll.u32 %s1787_s9, 4  ;;  %s200_s10 = int_to_ptr.vmem [resolvable:$true] %s199_s10 }
   0xe   : > { %s211_s14 = sshll.u32 %s2251_s2, 4  ;;  %s1788_s15 = smov 192   ;;  %s212_s14 = int_to_ptr.hbm [resolvable:$true] %s211_s14 }
   0xf   : > { %p1448_p9 = pneg %p1876_p8  ;;  %s1789_s16 = smov 12  }
  0x10   : > { %s1790_s17 = smov [#allocation7]   ;;  %s1791_s19 = smov 64  }
  0x11   : > { %p1884_p10 = pnand %p1448_p9, %p45_p1  ;;  %s213_s18 = sshll.u32 %s1790_s17, 4  ;;  %s214_s18 = int_to_ptr.vmem [resolvable:$true] %s213_s18 }
  0x12   : > { %s1792_s20 = smov 4   ;;  %s231_s30 = sshll.u32 %s2254_s5, 4  ;;  %s232_s30 = int_to_ptr.hbm [resolvable:$true] %s231_s30 }
  0x13   : > { %1451 = dma.hbm_to_vmem [thread:$0]  (!%p1884_p10), %s198_s7, 3072, %s200_s10, [#allocation6], %s1788_s15, %s1788_s15, %s1789_s16  }
  0x14   : > { %1454 = dma.hbm_to_vmem [thread:$0]  (!%p1884_p10), %s212_s14, 1024, %s214_s18, [#allocation6], %s1791_s19, %s1791_s19, %s1792_s20  }
  0x15   : > { %s1793_s7 = smov [#allocation8]   ;;  %s2256_s10 = smov 128  }
  0x16   : > { %s233_s9 = sshll.u32 %s1793_s7, 4  ;;  %s2257_s12 = smov 8   ;;  %s234_s9 = int_to_ptr.vmem [resolvable:$true] %s233_s9 }
  0x17   : > { %1457 = dma.hbm_to_vmem [thread:$0]  (!%p1884_p10), %s232_s30, 2048, %s234_s9, [#allocation9], %s2256_s10, %s2256_s10, %s2257_s12  }
  0x18   : > { %s1905_s13 = sadd.s32 1, %s1785_s24   ;;  %s31_s15 = sadd.s32 1, %s1781_s23 }
  0x19   : > { %s28_s14 = ssub.s32 %s1785_s24, %s1905_s13  ;;  %p38_p13 = scmp.ne.s32.totalorder %s1781_s23, %s1777_s22 }
  0x1a   : > { %p29_p12 = scmp.eq.s32.totalorder %s28_s14, 0  ;;  %p39_p0 = scmp.eq.s32.totalorder %s1785_s24, 0 }
  0x1b   : > { %p1918_p3 = por %p173_p2, %p38_p13  ;;  %p1469_p5 = scmp.lt.s32.totalorder %s1785_s24, 2 }
  0x1c   : > { %s1914_s16 = scalar_select %p29_p12, %s1781_s23, %s31_s15  }
  0x1d   : > { %s247_s11 = sand.u32 1, %s1781_s23   ;;  %s1382_s18 = sshll.u32 %s1785_s24, 6 }
  0x1e   : > { %p40_p7 = por %p39_p0, %p38_p13  ;;  %s1232_s19 = sshll.u32 %s247_s11, 6 }
  0x1f   : > { %s256_s29 = scalar_lea.hbm %s2249_s0, %s1382_s18  ;;  %s251_s7 = scalar_lea.vmem [#allocation2], %s1232_s19 }
  0x20   : > { %s257_s30 = sshll.u32 %s256_s29, 4  ;;  %s259_s9 = sshll.u32 %s251_s7, 4  ;;  %s258_s30 = int_to_ptr.hbm [resolvable:$true] %s257_s30  ;;  %s260_s9 = int_to_ptr.vmem [resolvable:$true] %s259_s9 }
  0x21   : > { %p1928_p9 = pnand %p1469_p5, %p40_p7  ;;  %s248_s15 = scalar_lea.sflag [#allocation3], %s247_s11 }
  0x22   : > { %s1681_s10 = sshra.s32 %s258_s30, 4  ;;  %s1688_s19 = scalar_lea.hbm %s2249_s0, 128  ;;  %s1682_s10 = int_to_ptr.hbm [resolvable:$true] %s1681_s10 }
  0x23   : > { %s1683_s12 = scalar_lea.hbm %s1682_s10, 64  ;;  %p1685_p10 = pneg %p1928_p9 }
  0x24   : > { %p1684_p2 = scmp.ne.s32.totalorder %s1682_s10, %s1683_s12  ;;  %p1689_p0 = scmp.lt.s32.totalorder %s1682_s10, %s2249_s0 }
  0x25   : > { %p1690_p5 = scmp.lt.s32.totalorder %s1688_s19, %s1683_s12 }
  0x26   : > { %p1686_p12 = pnand %p1685_p10, %p1684_p2 }
  0x27   : > { %p1691_p7 = por %p1690_p5, %p1689_p0 }
  0x28   : > { %p1687_p13 = pneg %p1686_p12 }
  0x2a   : > { %p1692_p11 = pnand %p1691_p7, %p1687_p13 }
  0x2c   : > { %1695 = shalt.err (!%p1692_p11)
}
  0x2d   : > { %s2264_s11 = smov 8   ;;  %s2265_s7 = smov 128  }
  0x2e   : > { %1461 = dma.hbm_to_vmem [thread:$0]  (!%p1928_p9), %s258_s30, 1024, %s260_s9, %s248_s15, %s2265_s7, %s2265_s7, %s2264_s11  }
  0x2f   : > { %271 = sbr.rel (%p1876_p8) target bundleno = 1396 (0x574), region = 44  ;;  %s1948_s18 = sand.u32 (!%p1876_p8), 1, %s1777_s22  }
  0x30   : > { %s1236_s10 = sshll.u32 (!%p1876_p8), %s1948_s18, 6  ;;  %s274_s12 = scalar_lea.sflag (!%p1876_p8), [#allocation3], %s1948_s18 }
  0x31   : > { %s1954_s20 = scalar_lea.vmem (!%p1876_p8), [#allocation2], %s1236_s10 }
  0x34   : > { %1756 = dma.done.wait (%p1863_p4), %s274_s12, 1024  }
  0x35   : > { %1758 = vsyncadd (%p1863_p4), %s274_s12, 4294966272 }
  0x36   : > { %1760 = dma.done.wait (%p45_p1), [#allocation6], 4096  }
  0x37   : > { %1762 = vsyncadd (%p45_p1), [#allocation6], 4294963200 }
  0x38   : > { %1764 = dma.done.wait (%p45_p1), [#allocation9], 2048  }
  0x39   : > { %1766 = vsyncadd (%p45_p1), [#allocation9], 4294965248  ;;  %v1327_v0 = vld [vmem:[#allocation5 + $0xa8] sm:$0xf]  ;;  %v1405_v1 = vld [vmem:[#allocation5 + $0xb0] sm:$0xf0] }
  0x3a   : > { %v1315_v2 = vld [vmem:[#allocation5 + $0x90] sm:$0xf]  ;;  %v1328_v3 = vor.u32 %v1405_v1, %v1327_v0  ;;  %v1402_v4 = vld [vmem:[#allocation5 + $0x98] sm:$0xf0]  ;;  %v1303_v6 = vld [vmem:[#allocation5 + $0x78] sm:$0xf] }
  0x3b   : > { %v1316_v5 = vor.u32 %v1402_v4, %v1315_v2  ;;  %v1399_v7 = vld [vmem:[#allocation5 + $0x80] sm:$0xf0]  ;;  %v1404_v8 = vld [vmem:[#allocation5 + $0xac] sm:$0xf]  ;;  %v1329_v9 = vld [vmem:[#allocation5 + $0xb4] sm:$0xf0] }
  0x3c   : > { %495 = vmatpush.bf16.msra.mxu0 %v1328_v3  ;;  %v1401_v10 = vld [vmem:[#allocation5 + $0x94] sm:$0xf]  ;;  %v1304_v11 = vor.u32 %v1399_v7, %v1303_v6  ;;  %v1332_v12 = vor.u32 %v1404_v8, %v1329_v9  ;;  %v1317_v13 = vld [vmem:[#allocation5 + $0x9c] sm:$0xf0]  ;;  %v1396_v15 = vld [vmem:[#allocation5 + $0x68] sm:$0xf0] }
  0x3d   : > { %v1291_v14 = vld [vmem:[#allocation5 + $0x60] sm:$0xf]  ;;  %v1320_v16 = vor.u32 %v1401_v10, %v1317_v13  ;;  %v1398_v17 = vld [vmem:[#allocation5 + $0x7c] sm:$0xf]  ;;  %v1305_v18 = vld [vmem:[#allocation5 + $0x84] sm:$0xf0] }
  0x3e   : > { %524 = vmatpush.bf16.msra.mxu1 %v1332_v12  ;;  %v1292_v19 = vor.u32 %v1396_v15, %v1291_v14  ;;  %v1279_v20 = vld [vmem:[#allocation5 + $0x48] sm:$0xf]  ;;  %v1393_v21 = vld [vmem:[#allocation5 + $0x50] sm:$0xf0]  ;;  %v1308_v22 = vor.u32 %v1398_v17, %v1305_v18  ;;  %v1267_v24 = vld [vmem:[#allocation5 + $0x30] sm:$0xf] }
  0x3f   : > { %v1280_v23 = vor.u32 %v1393_v21, %v1279_v20  ;;  %v1390_v25 = vld [vmem:[#allocation5 + $0x38] sm:$0xf0]  ;;  %v1395_v26 = vld [vmem:[#allocation5 + $0x64] sm:$0xf]  ;;  %v1293_v27 = vld [vmem:[#allocation5 + $0x6c] sm:$0xf0] }
  0x40   : > { %496 = vmatpush.bf16.msra.mxu0 %v1316_v5  ;;  %v1392_v28 = vld [vmem:[#allocation5 + $0x4c] sm:$0xf]  ;;  %v1268_v29 = vor.u32 %v1390_v25, %v1267_v24  ;;  %v1296_v30 = vor.u32 %v1395_v26, %v1293_v27  ;;  %v1281_v31 = vld [vmem:[#allocation5 + $0x54] sm:$0xf0]  ;;  %v1387_v33 = vld [vmem:[#allocation5 + $0x20] sm:$0xf0] }
  0x41   : > { %v1255_v32 = vld [vmem:[#allocation5 + $0x18] sm:$0xf]  ;;  %v1284_v34 = vor.u32 %v1392_v28, %v1281_v31  ;;  %v1389_v35 = vld [vmem:[#allocation5 + $0x34] sm:$0xf]  ;;  %v1269_v36 = vld [vmem:[#allocation5 + $0x3c] sm:$0xf0] }
  0x42   : > { %525 = vmatpush.bf16.msra.mxu1 %v1320_v16  ;;  %v1256_v37 = vor.u32 %v1387_v33, %v1255_v32  ;;  %v1243_v38 = vld [vmem:[#allocation5] sm:$0xf]  ;;  %v1384_v39 = vld [vmem:[#allocation5 + $0x8] sm:$0xf0]  ;;  %v1272_v40 = vor.u32 %v1389_v35, %v1269_v36  ;;  %v1386_v41 = vld [vmem:[#allocation5 + $0x1c] sm:$0xf] }
  0x43   : > { %v1257_v42 = vld [vmem:[#allocation5 + $0x24] sm:$0xf0]  ;;  %v1244_v43 = vor.u32 %v1384_v39, %v1243_v38  ;;  %v323_v44 = vld [vmem:[%s1954_s20] sm:$0xff]  ;;  %v1245_v49 = vld [vmem:[#allocation5 + $0xc] sm:$0xf0]  ;;  %vm740_vm12 = vcmask 523264  }
  0x44   : > { %497 = vmatpush.bf16.msra.mxu0 %v1304_v11  ;;  %v324_v45 = vld [vmem:[%s1954_s20 + $0x8] sm:$0xff]  ;;  %v1260_v46 = vor.u32 %v1386_v41, %v1257_v42  ;;  %v1383_v48 = vld [vmem:[#allocation5 + $0x4] sm:$0xf]  ;;  %v325_v51 = vld [vmem:[%s1954_s20 + $0x10] sm:$0xff]  ;;  %s321_s14 = scalar_lea.vmem [#allocation10], %s1236_s10  ;;  %s1415_s15 = sshll.u32 %s1854_s25, 6 }
  0x45   : > { %v1970_v47 = vpack.c.bf16 %v324_v45, %v323_v44  ;;  %v1248_v50 = vor.u32 %v1383_v48, %v1245_v49  ;;  %v326_v52 = vld [vmem:[%s1954_s20 + $0x18] sm:$0xff]  ;;  %v327_v54 = vld [vmem:[%s1954_s20 + $0x20] sm:$0xff]  ;;  %v328_v55 = vld [vmem:[%s1954_s20 + $0x28] sm:$0xff]  ;;  %s1120_s29 = scalar_lea.hbm %s2255_s6, %s1415_s15  ;;  %s1121_s11 = sshll.u32 %s321_s14, 4  ;;  %s1122_s11 = int_to_ptr.vmem [resolvable:$true] %s1121_s11 }
  0x46   : > { %526 = vmatpush.bf16.msra.mxu1 %v1308_v22  ;;  %v1976_v53 = vpack.c.bf16 %v326_v52, %v325_v51  ;;  %v1982_v56 = vpack.c.bf16 %v328_v55, %v327_v54  ;;  %v329_v57 = vld [vmem:[%s1954_s20 + $0x30] sm:$0xff]  ;;  %v330_v58 = vld [vmem:[%s1954_s20 + $0x38] sm:$0xff]  ;;  %s1123_s7 = sshll.u32 %s1120_s29, 4  ;;  %s1109_s10 = scalar_lea.sflag [#allocation4], %s1948_s18  ;;  %s1124_s7 = int_to_ptr.hbm [resolvable:$true] %s1123_s7 }
  0x47   : > { %v1988_v59 = vpack.c.bf16 %v330_v58, %v329_v57  ;;  %s1725_s12 = sshra.s32 %s1124_s7, 4  ;;  %s1731_s8 = scalar_lea.hbm %s2255_s6, 128  ;;  %s1726_s12 = int_to_ptr.hbm [resolvable:$true] %s1725_s12 }
  0x48   : > { %498 = vmatpush.bf16.msra.mxu0 %v1292_v19  ;;  %s1727_s20 = scalar_lea.hbm %s1726_s12, 64  ;;  %p1732_p11 = scmp.lt.s32.totalorder %s1726_s12, %s2255_s6 }
  0x49   : > { %p1728_p1 = scmp.ne.s32.totalorder %s1726_s12, %s1727_s20  ;;  %p1733_p9 = scmp.lt.s32.totalorder %s1731_s8, %s1727_s20 }
  0x4a   : > { %527 = vmatpush.bf16.msra.mxu1 %v1296_v30 }
  0x4b   : > { %p1729_p4 = pnand %p1728_p1, %p1918_p3  ;;  %p1734_p2 = por %p1733_p9, %p1732_p11 }
  0x4c   : > { %499 = vmatpush.bf16.msra.mxu0 %v1280_v23 }
  0x4d   : > { %p1730_p8 = pneg %p1729_p4 }
  0x4e   : > { %528 = vmatpush.bf16.msra.mxu1 %v1284_v34 }
  0x4f   : > { %p1735_p10 = pnand %p1734_p2, %p1730_p8 }
  0x50   : > { %500 = vmatpush.bf16.msra.mxu0 %v1268_v29 }
  0x52   : > { %529 = vmatpush.bf16.msra.mxu1 %v1272_v40 }
  0x54   : > { %501 = vmatpush.bf16.msra.mxu0 %v1256_v37 }
  0x56   : > { %530 = vmatpush.bf16.msra.mxu1 %v1260_v46 }
  0x58   : > { %502 = vmatpush.bf16.msra.mxu0 %v1244_v43 }
  0x5a   : > { %531 = vmatpush.bf16.msra.mxu1 %v1248_v50 }
  0x5b   : > { %503 = vmatmul.bf16.vlgmr.msra.gmra.mxu0 %v1970_v47 }
  0x5d   : > { %532 = vmatmul.bf16.vlgmr.msra.gmra.mxu1 %v1970_v47 }
  0x6b   : > { %508 = vmatmul.bf16.gmra.mxu0 %v1976_v53 }
  0x6d   : > { %537 = vmatmul.bf16.gmra.mxu1 %v1976_v53 }
  0x7b   : > { %513 = vmatmul.bf16.gmra.mxu0 %v1982_v56 }
  0x7d   : > { %542 = vmatmul.bf16.gmra.mxu1 %v1982_v56 }
  0x8b   : > { %518 = vmatmul.bf16.gmra.mxu0 %v1988_v59 }
  0x8d   : > { %547 = vmatmul.bf16.gmra.mxu1 %v1988_v59 }
  0xd8   : > { %v1992_v60 = vpop.f32.mrf.mxu0 }
  0xd9   : > { %v582_v8 = vmul.f32 %v1992_v60, %v1992_v60 }
  0xda   : > { %v1994_v61 = vpop.f32.mrf.mxu1 }
  0xdb   : > { %v615_v10 = vmul.f32 %v1994_v61, %v1994_v61 }
  0xe0   : > { %v1996_v62 = vpop.f32.mrf.mxu0 }
  0xe1   : > { %v583_v7 = vmul.f32 %v1996_v62, %v1996_v62 }
  0xe2   : > { %v1998_v63 = vpop.f32.mrf.mxu1 }
  0xe3   : > { %v616_v11 = vmul.f32 %v1998_v63, %v1998_v63  ;;  %v590_v13 = vadd.f32 %v583_v7, %v582_v8 }
  0xe5   : > { %v623_v18 = vadd.f32 %v616_v11, %v615_v10 }
  0xe8   : > { %v2000_v0 = vpop.f32.mrf.mxu0 }
  0xe9   : > { %v584_v9 = vmul.f32 %v2000_v0, %v2000_v0 }
  0xea   : > { %v2002_v1 = vpop.f32.mrf.mxu1 }
  0xeb   : > { %v591_v16 = vadd.f32 %v590_v13, %v584_v9  ;;  %v617_v19 = vmul.f32 %v2002_v1, %v2002_v1 }
  0xed   : > { %v624_v24 = vadd.f32 %v623_v18, %v617_v19 }
  0xf0   : > { %v2004_v2 = vpop.f32.mrf.mxu0 }
  0xf1   : > { %v585_v14 = vmul.f32 %v2004_v2, %v2004_v2 }
  0xf2   : > { %v2006_v3 = vpop.f32.mrf.mxu1 }
  0xf3   : > { %v592_v20 = vadd.f32 %v591_v16, %v585_v14  ;;  %v618_v27 = vmul.f32 %v2006_v3, %v2006_v3 }
  0xf5   : > { %v625_v31 = vadd.f32 %v624_v24, %v618_v27 }
  0xf8   : > { %v2008_v4 = vpop.f32.mrf.mxu0 }
  0xf9   : > { %v586_v17 = vmul.f32 %v2008_v4, %v2008_v4 }
  0xfa   : > { %v2010_v5 = vpop.f32.mrf.mxu1 }
  0xfb   : > { %v593_v22 = vadd.f32 %v592_v20, %v586_v17  ;;  %v619_v32 = vmul.f32 %v2010_v5, %v2010_v5 }
  0xfd   : > { %v626_v34 = vadd.f32 %v625_v31, %v619_v32 }
 0x100   : > { %v2012_v6 = vpop.f32.mrf.mxu0 }
 0x101   : > { %v587_v21 = vmul.f32 %v2012_v6, %v2012_v6 }
 0x102   : > { %v2024_v12 = vpop.f32.mrf.mxu1 }
 0x103   : > { %v594_v26 = vadd.f32 %v593_v22, %v587_v21  ;;  %v620_v35 = vmul.f32 %v2024_v12, %v2024_v12 }
 0x105   : > { %v627_v37 = vadd.f32 %v626_v34, %v620_v35 }
 0x108   : > { %v2028_v15 = vpop.f32.mrf.mxu0 }
 0x109   : > { %v588_v23 = vmul.f32 %v2028_v15, %v2028_v15 }
 0x10a   : > { %v2038_v25 = vpop.f32.mrf.mxu1 }
 0x10b   : > { %v595_v29 = vadd.f32 %v594_v26, %v588_v23  ;;  %v621_v38 = vmul.f32 %v2038_v25, %v2038_v25 }
 0x10d   : > { %v628_v41 = vadd.f32 %v627_v37, %v621_v38 }
 0x110   : > { %v2042_v28 = vpop.f32.mrf.mxu0 }
 0x111   : > { %v589_v30 = vmul.f32 %v2042_v28, %v2042_v28 }
 0x112   : > { %v2052_v39 = vpop.f32.mrf.mxu1 }
 0x113   : > { %v596_v33 = vadd.f32 %v595_v29, %v589_v30  ;;  %v622_v42 = vmul.f32 %v2052_v39, %v2052_v39 }
 0x115   : > { %v597_v36 = vrot.slane %v596_v33, 4  ;;  %v629_v44 = vadd.f32 %v628_v41, %v622_v42 }
 0x117   : > { %v598_v40 = vadd.f32 %v597_v36, %v596_v33  ;;  %v630_v46 = vrot.slane %v629_v44, 4 }
 0x119   : > { %v599_v43 = vrot.slane %v598_v40, 2  ;;  %v631_v49 = vadd.f32 %v630_v46, %v629_v44 }
 0x11b   : > { %v600_v45 = vadd.f32 %v599_v43, %v598_v40  ;;  %v632_v51 = vrot.slane %v631_v49, 2  ;;  %v648_v40 = vld [vmem:[%s2253_s4] sm:$0x1] }
 0x11d   : > { %v601_v48 = vrot.slane %v600_v45, 1  ;;  %v633_v52 = vadd.f32 %v632_v51, %v631_v49 }
 0x11f   : > { %v602_v50 = vadd.f32 %v601_v48, %v600_v45  ;;  %v634_v54 = vrot.slane %v633_v52, 1 }
 0x121   : > { %1519 = vrsqrt.f32 %v602_v50  ;;  %v635_v55 = vadd.f32 %v634_v54, %v633_v52  ;;  %vm610_vm0 = vcmp.eq.f32.partialorder %v602_v50, inf  ;;  %v613_v17 = vand.u32 2147483648, %v602_v50 }
 0x122   : > { %vm612_vm1 = vcmp.eq.f32.partialorder %v602_v50, 0.0 }
 0x123   : > { %1521 = vrsqrt.f32 %v635_v55  ;;  %vm643_vm2 = vcmp.eq.f32.partialorder %v635_v55, inf  ;;  %v646_v24 = vand.u32 2147483648, %v635_v55  ;;  %vm645_vm3 = vcmp.eq.f32.partialorder %v635_v55, 0.0 }
 0x127   : > { %v1520_v57 = vpop.eup %1519 }
 0x128   : > { %v604_v58 = vmul.f32 %v1520_v57, %v602_v50 }
 0x129   : > { %v1522_v9 = vpop.eup %1521 }
 0x12a   : > { %v605_v7 = vmul.f32 %v1520_v57, %v604_v58  ;;  %v637_v11 = vmul.f32 %v1522_v9, %v635_v55 }
 0x12c   : > { %v606_v8 = vmul.f32 0.5, %v605_v7  ;;  %v638_v14 = vmul.f32 %v1522_v9, %v637_v11 }
 0x12e   : > { %v607_v10 = vsub.f32 1.5, %v606_v8  ;;  %v639_v18 = vmul.f32 0.5, %v638_v14 }
 0x130   : > { %v608_v13 = vmul.f32 %v1520_v57, %v607_v10  ;;  %v640_v21 = vsub.f32 1.5, %v639_v18 }
 0x132   : > { %v609_v16 = vmul.f32 %v608_v13, %v602_v50  ;;  %v641_v23 = vmul.f32 %v1522_v9, %v640_v21 }
 0x134   : > { %v611_v19 = vsel %vm610_vm0, %v602_v50, %v609_v16  ;;  %v642_v26 = vmul.f32 %v641_v23, %v635_v55 }
 0x135   : > { %v614_v20 = vsel %vm612_vm1, %v613_v17, %v611_v19 }
 0x136   : > { %v649_v22 = vmax.f32 %v614_v20, 1e-12  ;;  %v644_v27 = vsel %vm643_vm2, %v635_v55, %v642_v26 }
 0x137   : > { %v647_v29 = vsel %vm645_vm3, %v646_v24, %v644_v27 }
 0x138   : > { %1523 = vrcp.f32 %v649_v22  ;;  %v665_v30 = vmax.f32 %v647_v29, 1e-12  ;;  %v661_v34 = vand.u32 2147483648, %v649_v22  ;;  %v659_v36 = vand.u32 2147483647, %v649_v22 }
 0x139   : > { %vm655_vm5 = vweird.f32 %v649_v22 }
 0x13a   : > { %1525 = vrcp.f32 %v665_v30  ;;  %v662_v41 = vor.u32 1.1754944e-38, %v661_v34  ;;  %vm660_vm7 = vcmp.eq.f32.partialorder %v659_v36, 8.507059e+37  ;;  %vm671_vm8 = vweird.f32 %v665_v30 }
 0x13b   : > { %v677_v44 = vand.u32 2147483648, %v665_v30  ;;  %v675_v48 = vand.u32 2147483647, %v665_v30 }
 0x13d   : > { %v678_v52 = vor.u32 1.1754944e-38, %v677_v44  ;;  %vm676_vm11 = vcmp.eq.f32.partialorder %v675_v48, 8.507059e+37 }
 0x13e   : > { %v1524_v31 = vpop.eup %1523 }
 0x13f   : > { %v651_v32 = vmul.f32 %v1524_v31, %v649_v22  ;;  %vm656_vm4 = vweird.f32 %v1524_v31 }
 0x140   : > { %v1526_v37 = vpop.eup %1525  ;;  %vm657_vm6 = vmor %vm655_vm5, %vm656_vm4 }
 0x141   : > { %v652_v33 = vsub.f32 1.0, %v651_v32  ;;  %v667_v42 = vmul.f32 %v1526_v37, %v665_v30  ;;  %vm672_vm9 = vweird.f32 %v1526_v37 }
 0x142   : > { %vm673_vm10 = vmor %vm671_vm8, %vm672_vm9 }
 0x143   : > { %v653_v35 = vmul.f32 %v1524_v31, %v652_v33  ;;  %v668_v46 = vsub.f32 1.0, %v667_v42  ;;  %v721_v42 = vld [vmem:[#allocation8 + $0x68] sm:$0xff] }
 0x145   : > { %v654_v38 = vadd.f32 %v1524_v31, %v653_v35  ;;  %v669_v50 = vmul.f32 %v1526_v37, %v668_v46  ;;  %v722_v46 = vld [vmem:[#allocation8 + $0x70] sm:$0xff] }
 0x147   : > { %v658_v43 = vsel %vm657_vm6, %v1524_v31, %v654_v38  ;;  %v670_v54 = vadd.f32 %v1526_v37, %v669_v50  ;;  %v720_v38 = vld [vmem:[#allocation8 + $0x60] sm:$0xff] }
 0x148   : > { %v663_v45 = vsel %vm660_vm7, %v662_v41, %v658_v43 }
 0x149   : > { %v664_v49 = vmul.f32 %v663_v45, %v648_v40  ;;  %v674_v58 = vsel %vm673_vm10, %v1526_v37, %v670_v54  ;;  %v719_v45 = vld [vmem:[#allocation8 + $0x58] sm:$0xff] }
 0x14a   : > { %v679_v7 = vsel %vm676_vm11, %v678_v52, %v674_v58  ;;  %v723_v52 = vld [vmem:[#allocation8 + $0x78] sm:$0xff] }
 0x14b   : > { %v682_v51 = vperm.slane %v664_v49, 0  ;;  %v703_v9 = vmul.f32 %v679_v7, %v2052_v39  ;;  %v702_v10 = vmul.f32 %v679_v7, %v2038_v25  ;;  %v700_v11 = vmul.f32 %v679_v7, %v2010_v5  ;;  %v715_v58 = vld [vmem:[#allocation8 + $0x38] sm:$0xff] }
 0x14c   : > { %v701_v13 = vmul.f32 %v679_v7, %v2024_v12  ;;  %v698_v17 = vmul.f32 %v679_v7, %v2002_v1  ;;  %v696_v18 = vmul.f32 %v679_v7, %v1994_v61  ;;  %v697_v39 = vmul.f32 %v679_v7, %v1998_v63 }
 0x14d   : > { %v684_v55 = vmul.f32 %v682_v51, %v1992_v60  ;;  %v685_v57 = vmul.f32 %v682_v51, %v1996_v62  ;;  %v707_v14 = vpack.c.bf16 %v703_v9, %v702_v10  ;;  %v699_v60 = vmul.f32 %v679_v7, %v2006_v3  ;;  %v718_v7 = vld [vmem:[#allocation8 + $0x50] sm:$0xff]  ;;  %v713_v10 = vld [vmem:[#allocation8 + $0x28] sm:$0xff] }
 0x14e   : > { %v706_v16 = vpack.c.bf16 %v701_v13, %v700_v11  ;;  %v686_v25 = vmul.f32 %v682_v51, %v2000_v0  ;;  %v687_v19 = vmul.f32 %v682_v51, %v2004_v2  ;;  %v704_v5 = vpack.c.bf16 %v697_v39, %v696_v18  ;;  %v716_v11 = vld [vmem:[#allocation8 + $0x40] sm:$0xff] }
 0x14f   : > { %v692_v8 = vpack.c.bf16 %v685_v57, %v684_v55  ;;  %769 = vmatpush.bf16.msra.mxu3 %v707_v14  ;;  %v705_v62 = vpack.c.bf16 %v699_v60, %v698_v17  ;;  %v688_v20 = vmul.f32 %v682_v51, %v2008_v4  ;;  %v689_v1 = vmul.f32 %v682_v51, %v2012_v6  ;;  %v714_v17 = vld [vmem:[#allocation8 + $0x30] sm:$0xff]  ;;  %v708_v18 = vld [vmem:[#allocation8] sm:$0xff] }
 0x150   : > { %v693_v12 = vpack.c.bf16 %v687_v19, %v686_v25  ;;  %v691_v21 = vmul.f32 %v682_v51, %v2042_v28  ;;  %v690_v61 = vmul.f32 %v682_v51, %v2028_v15  ;;  %v717_v51 = vld [vmem:[#allocation8 + $0x48] sm:$0xff]  ;;  %v712_v39 = vld [vmem:[#allocation8 + $0x20] sm:$0xff] }
 0x151   : > { %724 = vxpose.xlu0.c.b16.start [1/4] (short) %v692_v8, 128  ;;  %v694_v3 = vpack.c.bf16 %v689_v1, %v688_v20  ;;  %v709_v20 = vld [vmem:[#allocation8 + $0x8] sm:$0xff] }
 0x152   : > { %v695_v63 = vpack.c.bf16 %v691_v21, %v690_v61  ;;  %v1406_v21 = vld [vmem:[#allocation5 + $0xb8] sm:$0xf0] }
 0x153   : > { %770 = vmatpush.bf16.msra.mxu3 %v706_v16  ;;  %v711_v16 = vld [vmem:[#allocation8 + $0x18] sm:$0xff] }
 0x157   : > { %771 = vmatpush.bf16.msra.mxu3 %v705_v62 }
 0x15b   : > { %772 = vmatpush.bf16.msra.mxu3 %v704_v5  ;;  %v710_v5 = vld [vmem:[#allocation8 + $0x10] sm:$0xff] }
 0x161   : > { %725 = vxpose.xlu0.c.b16.cont [2/4] (short) %v693_v12, 128 }
 0x171   : > { %726 = vxpose.xlu0.c.b16.cont [3/4] (short) %v694_v3, 128  ;;  %v1335_v3 = vld [vmem:[#allocation5 + $0xb0] sm:$0xf] }
 0x172   : > { %v1336_v61 = vor.u32 %v1406_v21, %v1335_v3 }
 0x174   : > { %553 = vmatpush.bf16.msra.mxu2 %v1336_v61 }
 0x181   : > { %727 = vxpose.xlu0.c.b16.end [4/4] (short) %v695_v63, 128 }
 0x1fd   : > { %v732_v0 = vpop.trf.xlu0 }
 0x1fe   : > { %1337 = vmatmul.msk.bf16.vlgmr.msra.gmra.mxu3 %vm740_vm12, %v732_v0 }
 0x20d   : > { %v733_v2 = vpop.trf.xlu0 }
 0x20e   : > { %1338 = vmatmul.msk.bf16.gmra.mxu3 %vm740_vm12, %v733_v2  ;;  %v1323_v2 = vld [vmem:[#allocation5 + $0x98] sm:$0xf] }
 0x21d   : > { %v734_v22 = vpop.trf.xlu0 }
 0x21e   : > { %1339 = vmatmul.msk.bf16.gmra.mxu3 %vm740_vm12, %v734_v22  ;;  %v1403_v22 = vld [vmem:[#allocation5 + $0xa0] sm:$0xf0] }
 0x22d   : > { %v735_v4 = vpop.trf.xlu0 }
 0x22e   : > { %1340 = vmatmul.msk.bf16.gmra.mxu3 %vm740_vm12, %v735_v4  ;;  %v1324_v4 = vor.u32 %v1403_v22, %v1323_v2 }
 0x230   : > { %554 = vmatpush.bf16.msra.mxu2 %v1324_v4 }
 0x23d   : > { %v736_v6 = vpop.trf.xlu0 }
 0x23e   : > { %1341 = vmatmul.msk.bf16.gmra.mxu3 %vm740_vm12, %v736_v6 }
 0x24d   : > { %v737_v28 = vpop.trf.xlu0 }
 0x24e   : > { %1342 = vmatmul.msk.bf16.gmra.mxu3 %vm740_vm12, %v737_v28  ;;  %v1311_v28 = vld [vmem:[#allocation5 + $0x80] sm:$0xf] }
 0x25d   : > { %v738_v15 = vpop.trf.xlu0 }
 0x25e   : > { %1343 = vmatmul.msk.bf16.gmra.mxu3 %vm740_vm12, %v738_v15  ;;  %v1400_v15 = vld [vmem:[#allocation5 + $0x88] sm:$0xf0] }
 0x26d   : > { %v739_v23 = vpop.trf.xlu0 }
 0x26e   : > { %1344 = vmatmul.msk.bf16.gmra.mxu3 %vm740_vm12, %v739_v23  ;;  %v1312_v23 = vor.u32 %v1400_v15, %v1311_v28 }
 0x270   : > { %555 = vmatpush.bf16.msra.mxu2 %v1312_v23 }
 0x281   : > { %v774_v24 = vpop.f32.mrf.mxu3 }
 0x282   : > { %v2116_v25 = vadd.f32 %v774_v24, %v708_v18 }
 0x289   : > { %v776_v26 = vpop.f32.mrf.mxu3 }
 0x28a   : > { %v2125_v1 = vadd.f32 %v776_v26, %v709_v20  ;;  %v1299_v26 = vld [vmem:[#allocation5 + $0x68] sm:$0xf] }
 0x291   : > { %v779_v27 = vpop.f32.mrf.mxu3 }
 0x292   : > { %v2122_v12 = vadd.f32 %v779_v27, %v710_v5  ;;  %v1397_v27 = vld [vmem:[#allocation5 + $0x70] sm:$0xf0] }
 0x299   : > { %v781_v29 = vpop.f32.mrf.mxu3 }
 0x29a   : > { %v2110_v60 = vadd.f32 %v781_v29, %v711_v16  ;;  %v1300_v29 = vor.u32 %v1397_v27, %v1299_v26 }
 0x29c   : > { %556 = vmatpush.bf16.msra.mxu2 %v1300_v29 }
 0x2a1   : > { %v784_v30 = vpop.f32.mrf.mxu3 }
 0x2a2   : > { %v2118_v19 = vadd.f32 %v784_v30, %v712_v39 }
 0x2a9   : > { %v786_v31 = vpop.f32.mrf.mxu3 }
 0x2aa   : > { %v2104_v13 = vadd.f32 %v786_v31, %v713_v10  ;;  %v1287_v31 = vld [vmem:[#allocation5 + $0x50] sm:$0xf] }
 0x2b1   : > { %v789_v32 = vpop.f32.mrf.mxu3 }
 0x2b2   : > { %v2112_v62 = vadd.f32 %v789_v32, %v714_v17  ;;  %v1394_v32 = vld [vmem:[#allocation5 + $0x58] sm:$0xf0] }
 0x2b9   : > { %v791_v33 = vpop.f32.mrf.mxu3 }
 0x2ba   : > { %v2098_v8 = vadd.f32 %v791_v33, %v715_v58  ;;  %v1288_v33 = vor.u32 %v1394_v32, %v1287_v31 }
 0x2bc   : > { %557 = vmatpush.bf16.msra.mxu2 %v1288_v33 }
 0x2c1   : > { %v794_v34 = vpop.f32.mrf.mxu3 }
 0x2c2   : > { %v2106_v14 = vadd.f32 %v794_v34, %v716_v11 }
 0x2c9   : > { %v796_v35 = vpop.f32.mrf.mxu3 }
 0x2ca   : > { %v2092_v55 = vadd.f32 %v796_v35, %v717_v51  ;;  %v1251_v51 = vld [vmem:[#allocation5 + $0x8] sm:$0xf] }
 0x2d1   : > { %v799_v36 = vpop.f32.mrf.mxu3 }
 0x2d2   : > { %v2100_v9 = vadd.f32 %v799_v36, %v718_v7 }
 0x2d9   : > { %v801_v37 = vpop.f32.mrf.mxu3 }
 0x2da   : > { %v2086_v49 = vadd.f32 %v801_v37, %v719_v45  ;;  %v1275_v37 = vld [vmem:[#allocation5 + $0x38] sm:$0xf] }
 0x2e1   : > { %v804_v40 = vpop.f32.mrf.mxu3 }
 0x2e2   : > { %v805_v41 = vadd.f32 %v804_v40, %v720_v38  ;;  %v1391_v38 = vld [vmem:[#allocation5 + $0x40] sm:$0xf0] }
 0x2e3   : > { %v1276_v40 = vor.u32 %v1391_v38, %v1275_v37 }
 0x2e4   : > { %838 = vmax.xlane.f32.xlu2 %v805_v41 }
 0x2e5   : > { %558 = vmatpush.bf16.msra.mxu2 %v1276_v40 }
 0x2e9   : > { %v806_v43 = vpop.f32.mrf.mxu3 }
 0x2ea   : > { %v2083_v44 = vadd.f32 %v806_v43, %v721_v42  ;;  %v1263_v42 = vld [vmem:[#allocation5 + $0x20] sm:$0xf]  ;;  %v1388_v43 = vld [vmem:[#allocation5 + $0x28] sm:$0xf0] }
 0x2eb   : > { %v1264_v45 = vor.u32 %v1388_v43, %v1263_v42 }
 0x2ec   : > { %840 = vmax.xlane.f32.xlu2 %v2083_v44 }
 0x2ed   : > { %559 = vmatpush.bf16.msra.mxu2 %v1264_v45 }
 0x2f1   : > { %v809_v48 = vpop.f32.mrf.mxu3 }
 0x2f2   : > { %v2088_v50 = vadd.f32 %v809_v48, %v722_v46 }
 0x2f4   : > { %836 = vmax.xlane.f32.xlu2 %v2086_v49  ;;  %842 = vmax.xlane.f32.xlu1 %v2088_v50 }
 0x2f9   : > { %v811_v54 = vpop.f32.mrf.mxu3 }
 0x2fa   : > { %v2094_v57 = vadd.f32 %v811_v54, %v723_v52  ;;  %v1385_v52 = vld [vmem:[#allocation5 + $0x10] sm:$0xf0] }
 0x2fb   : > { %v1252_v54 = vor.u32 %v1385_v52, %v1251_v51 }
 0x2fc   : > { %832 = vmax.xlane.f32.xlu2 %v2092_v55  ;;  %844 = vmax.xlane.f32.xlu1 %v2094_v57 }
 0x2fd   : > { %560 = vmatpush.bf16.msra.mxu2 %v1252_v54 }
 0x300   : > { %561 = vmatmul.bf16.vlgmr.msra.gmra.mxu2 %v1970_v47 }
 0x304   : > { %828 = vmax.xlane.f32.xlu2 %v2098_v8  ;;  %834 = vmax.xlane.f32.xlu1 %v2100_v9 }
 0x30c   : > { %824 = vmax.xlane.f32.xlu2 %v2104_v13  ;;  %830 = vmax.xlane.f32.xlu1 %v2106_v14 }
 0x310   : > { %566 = vmatmul.bf16.gmra.mxu2 %v1976_v53 }
 0x314   : > { %820 = vmax.xlane.f32.xlu2 %v2110_v60  ;;  %826 = vmax.xlane.f32.xlu1 %v2112_v62 }
 0x31c   : > { %814 = vmax.xlane.f32.xlu2 %v2116_v25  ;;  %822 = vmax.xlane.f32.xlu1 %v2118_v19 }
 0x320   : > { %571 = vmatmul.bf16.gmra.mxu2 %v1982_v56 }
 0x324   : > { %818 = vmax.xlane.f32.xlu1 %v2122_v12 }
 0x32c   : > { %816 = vmax.xlane.f32.xlu1 %v2125_v1 }
 0x330   : > { %576 = vmatmul.bf16.gmra.mxu2 %v1988_v59 }
 0x357   : > { %v839_v63 = vpop.xlane.xlu2 %838 }
 0x358   : > { %v858_v0 = vsub.f32 %v805_v41, %v839_v63 }
 0x35a   : > { %v886_v6 = vmul.f32 1.442695, %v858_v0 }
 0x35c   : > { %1527 = vpow2.f32 %v886_v6 }
 0x35f   : > { %v841_v24 = vpop.xlane.xlu2 %840 }
 0x362   : > { %v2128_v30 = vpop.eup %1527 }
 0x363   : > { %918 = vadd.xlane.f32.xlu2 %v2128_v30 }
 0x367   : > { %v843_v34 = vpop.xlane.xlu1 %842  ;;  %v837_v35 = vpop.xlane.xlu2 %836 }
 0x368   : > { %v860_v36 = vsub.f32 %v2088_v50, %v843_v34  ;;  %v859_v50 = vsub.f32 %v2083_v44, %v841_v24  ;;  %v857_v39 = vsub.f32 %v2086_v49, %v837_v35 }
 0x36a   : > { %v890_v41 = vmul.f32 1.442695, %v860_v36  ;;  %v888_v16 = vmul.f32 1.442695, %v859_v50  ;;  %v884_v20 = vmul.f32 1.442695, %v857_v39 }
 0x36c   : > { %1529 = vpow2.f32 %v890_v41 }
 0x36f   : > { %v845_v46 = vpop.xlane.xlu1 %844  ;;  %v833_v58 = vpop.xlane.xlu2 %832 }
 0x370   : > { %v861_v48 = vsub.f32 %v2094_v57, %v845_v46 }
 0x372   : > { %v892_v7 = vmul.f32 1.442695, %v861_v48  ;;  %v2133_v10 = vpop.eup %1529 }
 0x373   : > { %922 = vadd.xlane.f32.xlu0 %v2133_v10 }
 0x374   : > { %1531 = vpow2.f32 %v892_v7 }
 0x375   : > { %1533 = vpow2.f32 %v888_v16 }
 0x377   : > { %v835_v11 = vpop.xlane.xlu1 %834  ;;  %v829_v5 = vpop.xlane.xlu2 %828 }
 0x378   : > { %v856_v17 = vsub.f32 %v2100_v9, %v835_v11  ;;  %v855_v9 = vsub.f32 %v2092_v55, %v833_v58  ;;  %v853_v55 = vsub.f32 %v2098_v8, %v829_v5 }
 0x37a   : > { %v882_v57 = vmul.f32 1.442695, %v856_v17  ;;  %v2139_v18 = vpop.eup %1531  ;;  %v880_v0 = vmul.f32 1.442695, %v855_v9  ;;  %v876_v28 = vmul.f32 1.442695, %v853_v55 }
 0x37b   : > { %924 = vadd.xlane.f32.xlu1 %v2139_v18  ;;  %v2144_v21 = vpop.eup %1533 }
 0x37c   : > { %1535 = vpow2.f32 %v882_v57 }
 0x37d   : > { %1537 = vpow2.f32 %v884_v20 }
 0x37f   : > { %v831_v44 = vpop.xlane.xlu1 %830  ;;  %v825_v49 = vpop.xlane.xlu2 %824 }
 0x380   : > { %v854_v3 = vsub.f32 %v2106_v14, %v831_v44  ;;  %v851_v8 = vsub.f32 %v2104_v13, %v825_v49 }
 0x382   : > { %v878_v47 = vmul.f32 1.442695, %v854_v3  ;;  %v2146_v61 = vpop.eup %1535  ;;  %v872_v29 = vmul.f32 1.442695, %v851_v8 }
 0x383   : > { %920 = vadd.xlane.f32.xlu1 %v2144_v21  ;;  %914 = vadd.xlane.f32.xlu2 %v2146_v61  ;;  %v2153_v2 = vpop.eup %1537 }
 0x384   : > { %1539 = vpow2.f32 %v878_v47 }
 0x385   : > { %1541 = vpow2.f32 %v880_v0  ;;  %v562_v0 = vpop.f32.mrf.mxu2 }
 0x387   : > { %v827_v63 = vpop.xlane.xlu1 %826  ;;  %v821_v53 = vpop.xlane.xlu2 %820 }
 0x388   : > { %v852_v14 = vsub.f32 %v2112_v62, %v827_v63  ;;  %v849_v34 = vsub.f32 %v2110_v60, %v821_v53 }
 0x38a   : > { %v874_v22 = vmul.f32 1.442695, %v852_v14  ;;  %v2155_v4 = vpop.eup %1539  ;;  %v868_v13 = vmul.f32 1.442695, %v849_v34 }
 0x38b   : > { %916 = vadd.xlane.f32.xlu1 %v2153_v2  ;;  %910 = vadd.xlane.f32.xlu2 %v2155_v4  ;;  %v2161_v23 = vpop.eup %1541 }
 0x38c   : > { %1543 = vpow2.f32 %v874_v22 }
 0x38d   : > { %1545 = vpow2.f32 %v876_v28 }
 0x38f   : > { %v823_v6 = vpop.xlane.xlu1 %822  ;;  %v815_v31 = vpop.xlane.xlu2 %814 }
 0x390   : > { %v850_v15 = vsub.f32 %v2118_v19, %v823_v6  ;;  %v846_v56 = vsub.f32 %v2116_v25, %v815_v31 }
 0x392   : > { %v870_v62 = vmul.f32 1.442695, %v850_v15  ;;  %v2163_v24 = vpop.eup %1543  ;;  %v862_v35 = vmul.f32 1.442695, %v846_v56  ;;  %v564_v15 = vpop.f32.mrf.mxu2 }
 0x393   : > { %912 = vadd.xlane.f32.xlu1 %v2161_v23  ;;  %906 = vadd.xlane.f32.xlu2 %v2163_v24  ;;  %v2170_v19 = vpop.eup %1545 }
 0x394   : > { %1547 = vpow2.f32 %v870_v62 }
 0x397   : > { %v819_v26 = vpop.xlane.xlu1 %818 }
 0x398   : > { %v848_v27 = vsub.f32 %v2122_v12, %v819_v26 }
 0x39a   : > { %v866_v32 = vmul.f32 1.442695, %v848_v27  ;;  %v2172_v33 = vpop.eup %1547 }
 0x39b   : > { %908 = vadd.xlane.f32.xlu1 %v2170_v19  ;;  %902 = vadd.xlane.f32.xlu2 %v2172_v33 }
 0x39c   : > { %1549 = vpow2.f32 %v866_v32 }
 0x39d   : > { %1551 = vpow2.f32 %v872_v29 }
 0x39e   : > { %1553 = vpow2.f32 %v868_v13 }
 0x39f   : > { %v817_v36 = vpop.xlane.xlu1 %816  ;;  %1555 = vpow2.f32 %v862_v35 }
 0x3a0   : > { %v847_v60 = vsub.f32 %v2125_v1, %v817_v36 }
 0x3a2   : > { %v2178_v12 = vpop.eup %1549  ;;  %v864_v38 = vmul.f32 1.442695, %v847_v60 }
 0x3a3   : > { %v2180_v37 = vpop.eup %1551  ;;  %898 = vadd.xlane.f32.xlu2 %v2178_v12 }
 0x3a4   : > { %904 = vadd.xlane.f32.xlu1 %v2180_v37  ;;  %v2186_v40 = vpop.eup %1553  ;;  %1557 = vpow2.f32 %v864_v38 }
 0x3a5   : > { %v2188_v25 = vpop.eup %1555 }
 0x3aa   : > { %v2192_v41 = vpop.eup %1557 }
 0x3ab   : > { %894 = vadd.xlane.f32.xlu2 %v2188_v25 }
 0x3ac   : > { %900 = vadd.xlane.f32.xlu1 %v2186_v40 }
 0x3b4   : > { %896 = vadd.xlane.f32.xlu1 %v2192_v41 }
 0x3d6   : > { %v919_v43 = vpop.xlane.xlu2 %918 }
 0x3e6   : > { %v923_v42 = vpop.xlane.xlu0 %922 }
 0x3e7   : > { %1559 = vrcp.f32 %v923_v42 }
 0x3ed   : > { %v1560_v59 = vpop.eup %1559 }
 0x3ee   : > { %v925_v1 = vpop.xlane.xlu1 %924  ;;  %v956_v51 = vmul.f32 %v1560_v59, %v2133_v10  ;;  %v1412_v59 = vld [vmem:[#allocation7 + $0x28] sm:$0xff] }
 0x3ef   : > { %1561 = vrcp.f32 %v925_v1 }
 0x3f0   : > { %1563 = vrcp.f32 %v919_v43  ;;  %v958_v43 = vpack.c.bf16 %v564_v15, %v562_v0 }
 0x3f5   : > { %v1562_v45 = vpop.eup %1561 }
 0x3f6   : > { %v915_v46 = vpop.xlane.xlu2 %914  ;;  %v921_v48 = vpop.xlane.xlu1 %920  ;;  %v957_v52 = vmul.f32 %v1562_v45, %v2139_v18 }
 0x3f7   : > { %1565 = vrcp.f32 %v921_v48  ;;  %v1564_v58 = vpop.eup %1563 }
 0x3f8   : > { %v969_v54 = vpack.c.bf16 %v957_v52, %v956_v51  ;;  %1567 = vrcp.f32 %v915_v46  ;;  %v954_v16 = vmul.f32 %v1564_v58, %v2128_v30  ;;  %v1410_v46 = vld [vmem:[#allocation7 + $0x18] sm:$0xff]  ;;  %v1409_v51 = vld [vmem:[#allocation7 + $0x10] sm:$0xff]  ;;  %v1408_v58 = vld [vmem:[#allocation7 + $0x8] sm:$0xff] }
 0x3fa   : > { %970 = vmatpush.bf16.xpose.msrb.mxu0 %v969_v54  ;;  %1416 = vmatpush.bf16.xpose.msrb.mxu2 %v969_v54 }
 0x3fd   : > { %v1566_v7 = vpop.eup %1565 }
 0x3fe   : > { %v911_v50 = vpop.xlane.xlu2 %910  ;;  %v917_v11 = vpop.xlane.xlu1 %916  ;;  %v955_v17 = vmul.f32 %v1566_v7, %v2144_v21  ;;  %v1407_v7 = vld [vmem:[#allocation7] sm:$0xff] }
 0x3ff   : > { %1569 = vrcp.f32 %v917_v11  ;;  %v1568_v10 = vpop.eup %1567 }
 0x400   : > { %v968_v57 = vpack.c.bf16 %v955_v17, %v954_v16  ;;  %1571 = vrcp.f32 %v911_v50  ;;  %v952_v44 = vmul.f32 %v1568_v10, %v2146_v61 }
 0x402   : > { %971 = vmatpush.bf16.xpose.msrb.mxu0 %v968_v57  ;;  %1417 = vmatpush.bf16.xpose.msrb.mxu2 %v968_v57 }
 0x405   : > { %v1570_v39 = vpop.eup %1569 }
 0x406   : > { %v907_v18 = vpop.xlane.xlu2 %906  ;;  %v913_v5 = vpop.xlane.xlu1 %912  ;;  %v953_v20 = vmul.f32 %v1570_v39, %v2153_v2 }
 0x407   : > { %1573 = vrcp.f32 %v913_v5  ;;  %v1572_v30 = vpop.eup %1571 }
 0x408   : > { %v967_v3 = vpack.c.bf16 %v953_v20, %v952_v44  ;;  %1575 = vrcp.f32 %v907_v18  ;;  %v950_v49 = vmul.f32 %v1572_v30, %v2155_v4  ;;  %v1518_v30 = vld [vmem:[%s2252_s3] ss:$0 sm:$0xff] }
 0x40a   : > { %972 = vmatpush.bf16.xpose.msrb.mxu0 %v967_v3  ;;  %1418 = vmatpush.bf16.xpose.msrb.mxu2 %v967_v3 }
 0x40d   : > { %v1574_v47 = vpop.eup %1573 }
 0x40e   : > { %v903_v21 = vpop.xlane.xlu2 %902  ;;  %v909_v9 = vpop.xlane.xlu1 %908  ;;  %v951_v63 = vmul.f32 %v1574_v47, %v2161_v23 }
 0x40f   : > { %1577 = vrcp.f32 %v909_v9  ;;  %v1576_v61 = vpop.eup %1575 }
 0x410   : > { %v966_v14 = vpack.c.bf16 %v951_v63, %v950_v49  ;;  %1579 = vrcp.f32 %v903_v21  ;;  %v948_v55 = vmul.f32 %v1576_v61, %v2163_v24  ;;  %v567_v24 = vpop.f32.mrf.mxu2 }
 0x412   : > { %973 = vmatpush.bf16.xpose.msrb.mxu0 %v966_v14  ;;  %1419 = vmatpush.bf16.xpose.msrb.mxu2 %v966_v14 }
 0x415   : > { %v1578_v2 = vpop.eup %1577 }
 0x416   : > { %v949_v6 = vmul.f32 %v1578_v2, %v2170_v19  ;;  %v899_v28 = vpop.xlane.xlu2 %898  ;;  %v1580_v4 = vpop.eup %1579 }
 0x417   : > { %v905_v22 = vpop.xlane.xlu1 %904  ;;  %v946_v8 = vmul.f32 %v1580_v4, %v2172_v33 }
 0x418   : > { %1581 = vrcp.f32 %v905_v22  ;;  %v965_v53 = vpack.c.bf16 %v949_v6, %v948_v55  ;;  %v569_v36 = vpop.f32.mrf.mxu2 }
 0x419   : > { %1583 = vrcp.f32 %v899_v28  ;;  %v959_v1 = vpack.c.bf16 %v569_v36, %v567_v24 }
 0x41a   : > { %974 = vmatpush.bf16.xpose.msrb.mxu0 %v965_v53  ;;  %1420 = vmatpush.bf16.xpose.msrb.mxu2 %v965_v53 }
 0x41e   : > { %v1582_v23 = vpop.eup %1581  ;;  %v895_v29 = vpop.xlane.xlu2 %894 }
 0x41f   : > { %v901_v62 = vpop.xlane.xlu1 %900  ;;  %v947_v26 = vmul.f32 %v1582_v23, %v2180_v37  ;;  %v1584_v19 = vpop.eup %1583 }
 0x420   : > { %1585 = vrcp.f32 %v901_v62  ;;  %v944_v34 = vmul.f32 %v1584_v19, %v2178_v12  ;;  %v572_v42 = vpop.f32.mrf.mxu2  ;;  %v1414_v12 = vld [vmem:[#allocation7 + $0x38] sm:$0xff] }
 0x421   : > { %v964_v27 = vpack.c.bf16 %v947_v26, %v946_v8  ;;  %1587 = vrcp.f32 %v895_v29  ;;  %1424 = vmatpush.bf16.msrb.mxu1 %v1414_v12 }
 0x423   : > { %975 = vmatpush.bf16.xpose.msrb.mxu0 %v964_v27  ;;  %1421 = vmatpush.bf16.xpose.msrb.mxu2 %v964_v27 }
 0x426   : > { %v1586_v31 = vpop.eup %1585 }
 0x427   : > { %v897_v32 = vpop.xlane.xlu1 %896  ;;  %v945_v56 = vmul.f32 %v1586_v31, %v2186_v40  ;;  %v1588_v35 = vpop.eup %1587  ;;  %v1413_v40 = vld [vmem:[#allocation7 + $0x30] sm:$0xff] }
 0x428   : > { %1589 = vrcp.f32 %v897_v32  ;;  %v942_v37 = vmul.f32 %v1588_v35, %v2188_v25  ;;  %1425 = vmatpush.bf16.msrb.mxu1 %v1413_v40  ;;  %v574_v45 = vpop.f32.mrf.mxu2  ;;  %v1411_v25 = vld [vmem:[#allocation7 + $0x20] sm:$0xff] }
 0x429   : > { %v963_v13 = vpack.c.bf16 %v945_v56, %v944_v34 }
 0x42b   : > { %976 = vmatpush.bf16.xpose.msrb.mxu0 %v963_v13  ;;  %1422 = vmatpush.bf16.xpose.msrb.mxu2 %v963_v13 }
 0x42c   : > { %1426 = vmatpush.bf16.msrb.mxu1 %v1412_v59 }
 0x42e   : > { %v1590_v33 = vpop.eup %1589 }
 0x42f   : > { %v943_v60 = vmul.f32 %v1590_v33, %v2192_v41  ;;  %v960_v41 = vpack.c.bf16 %v574_v45, %v572_v42 }
 0x430   : > { %1427 = vmatpush.bf16.msrb.mxu1 %v1411_v25  ;;  %v577_v48 = vpop.f32.mrf.mxu2 }
 0x431   : > { %v962_v38 = vpack.c.bf16 %v943_v60, %v942_v37 }
 0x433   : > { %977 = vmatpush.bf16.xpose.msrb.mxu0 %v962_v38  ;;  %1423 = vmatpush.bf16.xpose.msrb.mxu2 %v962_v38 }
 0x434   : > { %1428 = vmatpush.bf16.msrb.mxu1 %v1410_v46 }
 0x438   : > { %1429 = vmatpush.bf16.msrb.mxu1 %v1409_v51  ;;  %v579_v52 = vpop.f32.mrf.mxu2 }
 0x439   : > { %v961_v54 = vpack.c.bf16 %v579_v52, %v577_v48 }
 0x43a   : > { %978 = vmatmul.bf16.vlgmr.msrb.gmra.mxu0 %v958_v43  ;;  %983 = vmatmul.bf16.vlgmr.msrb.gmra.mxu2 %v959_v1 }
 0x43b   : > { %1071 = vmatpush.bf16.msra.mxu0 %v1414_v12 }
 0x43c   : > { %1430 = vmatpush.bf16.msrb.mxu1 %v1408_v58 }
 0x43f   : > { %1072 = vmatpush.bf16.msra.mxu0 %v1413_v40 }
 0x440   : > { %1431 = vmatpush.bf16.msrb.mxu1 %v1407_v7 }
 0x443   : > { %1073 = vmatpush.bf16.msra.mxu0 %v1412_v59 }
 0x447   : > { %1074 = vmatpush.bf16.msra.mxu0 %v1411_v25 }
 0x44a   : > { %988 = vmatmul.bf16.gmra.mxu2 %v960_v41 }
 0x44b   : > { %1075 = vmatpush.bf16.msra.mxu0 %v1410_v46 }
 0x44f   : > { %1076 = vmatpush.bf16.msra.mxu0 %v1409_v51 }
 0x453   : > { %1077 = vmatpush.bf16.msra.mxu0 %v1408_v58 }
 0x457   : > { %1078 = vmatpush.bf16.msra.mxu0 %v1407_v7 }
 0x45a   : > { %993 = vmatmul.bf16.gmra.mxu2 %v961_v54 }
 0x4b7   : > { %v979_v50 = vpop.f32.mrf.mxu0 }
 0x4bd   : > { %v984_v11 = vpop.f32.mrf.mxu2 }
 0x4bf   : > { %v981_v16 = vpop.f32.mrf.mxu0 }
 0x4c0   : > { %v999_v17 = vpack.c.bf16 %v981_v16, %v979_v50 }
 0x4c2   : > { %1079 = vmatmul.bf16.vlgmr.msra.gmra.mxu0 %v999_v17 }
 0x4c5   : > { %v986_v57 = vpop.f32.mrf.mxu2 }
 0x4c6   : > { %v1000_v10 = vpack.c.bf16 %v986_v57, %v984_v11 }
 0x4c8   : > { %1084 = vmatmul.bf16.vlgmr.msrb.gmra.mxu1 %v1000_v10 }
 0x4cd   : > { %v989_v39 = vpop.f32.mrf.mxu2 }
 0x4d5   : > { %v991_v18 = vpop.f32.mrf.mxu2 }
 0x4d6   : > { %v1001_v5 = vpack.c.bf16 %v991_v18, %v989_v39 }
 0x4d8   : > { %1089 = vmatmul.bf16.gmra.mxu1 %v1001_v5 }
 0x4dd   : > { %v994_v44 = vpop.f32.mrf.mxu2 }
 0x4e5   : > { %v996_v20 = vpop.f32.mrf.mxu2 }
 0x4e6   : > { %v1002_v3 = vpack.c.bf16 %v996_v20, %v994_v44 }
 0x4e8   : > { %1094 = vmatmul.bf16.gmra.mxu1 %v1002_v3 }
 0x53f   : > { %v1080_v47 = vpop.f32.mrf.mxu0 }
 0x540   : > { %v1081_v21 = vadd.f32 %v1518_v30, %v1080_v47 }
 0x542   : > { %1100 = vst [vmem:[%s321_s14] sm:$0xff] %v1081_v21 }
 0x545   : > { %v1085_v9 = vpop.f32.mrf.mxu1 }
 0x546   : > { %v1086_v49 = vadd.f32 %v1518_v30, %v1085_v9 }
 0x547   : > { %v1082_v63 = vpop.f32.mrf.mxu0 }
 0x548   : > { %1102 = vst [vmem:[%s321_s14 + $0x10] sm:$0xff] %v1086_v49  ;;  %v1083_v0 = vadd.f32 %v1518_v30, %v1082_v63 }
 0x54a   : > { %1101 = vst [vmem:[%s321_s14 + $0x8] sm:$0xff] %v1083_v0 }
 0x54d   : > { %v1087_v14 = vpop.f32.mrf.mxu1 }
 0x54e   : > { %v1088_v61 = vadd.f32 %v1518_v30, %v1087_v14 }
 0x550   : > { %1103 = vst [vmem:[%s321_s14 + $0x18] sm:$0xff] %v1088_v61 }
 0x555   : > { %v1090_v2 = vpop.f32.mrf.mxu1 }
 0x556   : > { %v1091_v22 = vadd.f32 %v1518_v30, %v1090_v2 }
 0x558   : > { %1104 = vst [vmem:[%s321_s14 + $0x20] sm:$0xff] %v1091_v22 }
 0x55d   : > { %v1092_v55 = vpop.f32.mrf.mxu1 }
 0x55e   : > { %v1093_v6 = vadd.f32 %v1518_v30, %v1092_v55 }
 0x560   : > { %1105 = vst [vmem:[%s321_s14 + $0x28] sm:$0xff] %v1093_v6 }
 0x565   : > { %v1095_v28 = vpop.f32.mrf.mxu1 }
 0x566   : > { %v1096_v53 = vadd.f32 %v1518_v30, %v1095_v28 }
 0x568   : > { %1106 = vst [vmem:[%s321_s14 + $0x30] sm:$0xff] %v1096_v53 }
 0x56d   : > { %v1097_v15 = vpop.f32.mrf.mxu1 }
 0x56e   : > { %v1098_v4 = vadd.f32 %v1518_v30, %v1097_v15 }
 0x570   : > { %1107 = vst [vmem:[%s321_s14 + $0x38] sm:$0xff] %v1098_v4 }
 0x571   : > { %1738 = shalt.err (!%p1735_p10)
}
 0x572   : > { %s1796_s18 = smov 128   ;;  %s1797_s14 = smov 8  }
 0x573   : > { %1446 = dma.vmem_to_hbm [thread:$0]  (%p1918_p3), %s1122_s11, 1024, %s1124_s7, %s1109_s10, %s1796_s18, %s1796_s18, %s1797_s14  }
 0x574 PF: > { %s1138_s15 = sand.u32 1, %s1773_s21   ;;  %p2266_p12 = scmp.ge.s32.totalorder %s1785_s24, 2 }
 0x575   : > { %s1139_s19 = scalar_lea.sflag [#allocation4], %s1138_s15 }
 0x576   : > { %p1463_p13 = pnand %p2266_p12, %p1868_p6 }
 0x578   : > { %p1464_p0 = pneg %p1463_p13 }
 0x57a   : > { %1768 = dma.done.wait (%p1464_p0), %s1139_s19, 1024  }
 0x57b   : > { %1770 = vsyncadd (%p1464_p0), %s1139_s19, 4294966272  ;;  %p21_p5 = scmp.ge.s32.totalorder %s1905_s13, 4   ;;  %s2267_s21 = smov %s1777_s22 }
 0x57c   : > { %s2268_s22 = smov %s1781_s23  ;;  %s2269_s23 = smov %s1914_s16 }
 0x57d   : > { %s2270_s24 = smov %s1905_s13  ;;  %23 = sbr.rel (!%p21_p5) target bundleno = 7 (0x7), region = 101 }
 0x582   :  { %1145 = vsyncpa [#allocation3], 1 }
 0x583   :  { %1147 = vsyncpa [#allocation3 + $0x1], 1 }
 0x584   :  { %1148 = vsyncpa [#allocation6], 1 }
 0x585   :  { %1149 = vsyncpa [#allocation9], 1 }
 0x586   :  { %1150 = vsyncpa [#allocation4], 1 }
 0x587   :  { %1152 = vsyncpa [#allocation4 + $0x1], 1 }

</bundles_post_ra>
